<compile_context>
chip_gen: v7x
topology: tpu7x:2x2x1
jax: 0.10.0
libtpu: 0.0.40
codegen_flags: <defaults>
</compile_context>

<pallas_src>
import functools

import jax
import jax.numpy as jnp
from jax import lax
from jax.experimental import pallas as pl
from jax.experimental.pallas import tpu as pltpu


_VMEM_LIMIT = 48 * 1024 * 1024  # below v7x's 64 MiB physical, above 32 MiB default


# ----------------------------- tiled linear kernels -------------------------

def _matmul_kernel(x_ref, w_ref, o_ref, acc_ref):
    @pl.when(pl.program_id(2) == 0)
    def _():
        acc_ref[...] = jnp.zeros_like(acc_ref)

    acc_ref[...] += jnp.dot(x_ref[...], w_ref[...],
                            preferred_element_type=jnp.float32)

    @pl.when(pl.program_id(2) == pl.num_programs(2) - 1)
    def _():
        o_ref[...] = acc_ref[...].astype(o_ref.dtype)


def _matmul_bias_kernel(x_ref, w_ref, b_ref, o_ref, acc_ref):
    @pl.when(pl.program_id(2) == 0)
    def _():
        acc_ref[...] = jnp.zeros_like(acc_ref)

    acc_ref[...] += jnp.dot(x_ref[...], w_ref[...],
                            preferred_element_type=jnp.float32)

    @pl.when(pl.program_id(2) == pl.num_programs(2) - 1)
    def _():
        o_ref[...] = (acc_ref[...] + b_ref[...].astype(jnp.float32)
                      ).astype(o_ref.dtype)


def _pick_tile(dim, candidates):
    """Largest candidate that evenly divides `dim`; else the full dim."""
    for c in candidates:
        if c <= dim and dim % c == 0:
            return c
    return dim


def pallas_linear(x, w, bias=None, *, out_dtype=jnp.bfloat16):
    """x: (M, K) @ w: (K, N) [+ bias: (N,)] -> (M, N). bf16 MXU, fp32 accum."""
    M, K = x.shape
    N = w.shape[1]
    tm = _pick_tile(M, (512, 256, 128, 64, 32, 16, 8))
    tn = _pick_tile(N, (512, 256, 128))
    tk = _pick_tile(K, (1024, 512, 256, 128))
    grid = (M // tm, N // tn, K // tk)

    x = x.astype(jnp.bfloat16)
    w = w.astype(jnp.bfloat16)

    in_specs = [pl.BlockSpec((tm, tk), lambda i, j, k: (i, k)),
                pl.BlockSpec((tk, tn), lambda i, j, k: (k, j))]
    if bias is None:
        kernel = _matmul_kernel
        args = (x, w)
    else:
        kernel = _matmul_bias_kernel
        in_specs.append(pl.BlockSpec((1, tn), lambda i, j, k: (0, j)))
        args = (x, w, bias.reshape(1, N).astype(jnp.float32))

    return pl.pallas_call(
        kernel,
        out_shape=jax.ShapeDtypeStruct((M, N), out_dtype),
        grid_spec=pltpu.PrefetchScalarGridSpec(
            num_scalar_prefetch=0,
            grid=grid,
            in_specs=in_specs,
            out_specs=pl.BlockSpec((tm, tn), lambda i, j, k: (i, j)),
            scratch_shapes=[pltpu.VMEM((tm, tn), jnp.float32)]),
        compiler_params=pltpu.CompilerParams(
            dimension_semantics=("parallel", "parallel", "arbitrary"),
            vmem_limit_bytes=_VMEM_LIMIT),
    )(*args)


# ----------------------------- attention kernel ------------------------------

def _attention_kernel(q_ref, k_ref, v_ref, m_ref, o_ref, *, heads, emb, causal):
    """One batch element per grid step; processes all heads.

    q_ref/k_ref/v_ref: (1, t, heads*emb) bf16 column-blocks of the fused QKV
    activation (the 1/sqrt(emb) scale is already folded into the Q weights).
    m_ref: (1, t, t) int8 external mask (nonzero = keep).
    o_ref: (1, t, heads*emb) bf16, head-major columns (matches torch layout).
    """
    t = q_ref.shape[1]
    q = q_ref[0]                      # (t, h*e) bf16
    k = k_ref[0]
    v = v_ref[0]
    keep = m_ref[0] != 0              # (t, t) bool

    if causal:
        row = lax.broadcasted_iota(jnp.int32, (t, t), 0)
        col = lax.broadcasted_iota(jnp.int32, (t, t), 1)
        causal_bad = col > row        # strictly-upper triangle masked

    outs = []
    for hi in range(heads):
        lo, hi_ = hi * emb, (hi + 1) * emb
        qh = q[:, lo:hi_]             # (t, e) bf16 (already scaled via weights)
        kh = k[:, lo:hi_]
        vh = v[:, lo:hi_]

        # q @ k^T without materializing a transpose: contract last axes.
        s = lax.dot_general(qh, kh, (((1,), (1,)), ((), ())),
                            preferred_element_type=jnp.float32)   # (t, t) f32

        if causal:
            s = jnp.where(causal_bad, -jnp.inf, s)
        # masked_fill(mask == 0, -1e9) — applied after causal, as in torch.
        s = jnp.where(keep, s, -1.0e9)

        # softmax (fp32), EUP reciprocal for the normalization.
        s = s - jnp.max(s, axis=-1, keepdims=True)
        p = jnp.exp(s)
        p = p * pl.reciprocal(jnp.sum(p, axis=-1, keepdims=True), approx=True)

        outs.append(jnp.dot(p.astype(jnp.bfloat16), vh,
                            preferred_element_type=jnp.float32))  # (t, e)

    # Single lane-dense (t, heads*emb) store.
    o_ref[0] = jnp.concatenate(outs, axis=-1).astype(o_ref.dtype)


# --------------------------------- module ------------------------------------

class SelfAttentionPallas:
    """Pallas port of the PyTorch SelfAttention module.

    The external `mask` is expected as (b, t, t), shared across heads
    (nonzero = keep, 0 = fill with -1e9). A per-head mask would need shape
    (b, h, t, t) and a (b, h) grid instead.
    """

    def __init__(self, emb, heads=8, mask=False, *, key):
        self.emb = emb
        self.heads = heads
        self.mask = mask
        k1, k2, k3, k4, k5 = jax.random.split(key, 5)

        # PyTorch nn.Linear default init: U(-1/sqrt(fan_in), 1/sqrt(fan_in)),
        # weight shape (out_features, in_features).
        def init_w(k, out_f, in_f):
            bound = 1.0 / (in_f ** 0.5)
            return jax.random.uniform(k, (out_f, in_f), jnp.float32, -bound, bound)

        self.w_k = init_w(k1, emb * heads, emb)   # tokeys
        self.w_q = init_w(k2, emb * heads, emb)   # toqueries
        self.w_v = init_w(k3, emb * heads, emb)   # tovalues
        self.w_u = init_w(k4, emb, emb * heads)   # unifyheads
        bound = 1.0 / ((emb * heads) ** 0.5)
        self.b_u = jax.random.uniform(k5, (emb,), jnp.float32, -bound, bound)

        # Pre-fused / pre-transposed bf16 weights. The full 1/sqrt(emb) scale is
        # folded into the query columns: (q/e^.25) @ (k/e^.25)^T == (q@k^T)/sqrt(e).
        scale = 1.0 / (emb ** 0.5)
        self.w_qkv_t = jnp.concatenate(
            [self.w_q.T * scale, self.w_k.T, self.w_v.T],
            axis=1).astype(jnp.bfloat16)                      # (e, 3*h*e)
        self.w_u_t = self.w_u.T.astype(jnp.bfloat16)          # (h*e, e)

    def __call__(self, x, mask):
        b, t, e = x.shape
        h = self.heads
        assert e == self.emb

        # Fused QKV projection: one tiled matmul, bf16 output.
        x_flat = x.reshape(b * t, e)
        qkv = pallas_linear(x_flat, self.w_qkv_t)             # (b*t, 3*h*e) bf16
        qkv = qkv.reshape(b, t, 3 * h * e)                    # free reshape

        # External mask: int8, NOT broadcast over heads.
        if mask is None:
            mask_i8 = jnp.ones((b, t, t), jnp.int8)
        else:
            mask_i8 = jnp.broadcast_to(mask, (b, t, t)).astype(jnp.int8)

        he = h * e
        kernel = functools.partial(_attention_kernel, heads=h, emb=e,
                                   causal=self.mask)
        attn_out = pl.pallas_call(
            kernel,
            out_shape=jax.ShapeDtypeStruct((b, t, he), jnp.bfloat16),
            grid_spec=pltpu.PrefetchScalarGridSpec(
                num_scalar_prefetch=0,
                grid=(b,),
                in_specs=[
                    # Q / K / V are column-blocks 0 / 1 / 2 of the fused QKV.
                    pl.BlockSpec((1, t, he), lambda bi: (bi, 0, 0)),
                    pl.BlockSpec((1, t, he), lambda bi: (bi, 0, 1)),
                    pl.BlockSpec((1, t, he), lambda bi: (bi, 0, 2)),
                    pl.BlockSpec((1, t, t), lambda bi: (bi, 0, 0)),
                ],
                out_specs=pl.BlockSpec((1, t, he), lambda bi: (bi, 0, 0))),
            compiler_params=pltpu.CompilerParams(
                dimension_semantics=("parallel",),
                vmem_limit_bytes=_VMEM_LIMIT),
        )(qkv, qkv, qkv, mask_i8)

        # (b, t, h*e) is already the unify-matmul layout: reshape is free.
        out = pallas_linear(attn_out.reshape(b * t, he), self.w_u_t, self.b_u,
                            out_dtype=jnp.float32)
        return out.reshape(b, t, e)


# ------------------------- plain-JAX reference ------------------------------

def reference_forward(attn, x, mask):
    b, t, e = x.shape
    h = attn.heads
    xf = x.reshape(b * t, e)
    keys = (xf @ attn.w_k.T).reshape(b, t, h, e)
    queries = (xf @ attn.w_q.T).reshape(b, t, h, e)
    values = (xf @ attn.w_v.T).reshape(b, t, h, e)

    def to_bh(z):
        return jnp.transpose(z, (0, 2, 1, 3)).reshape(b * h, t, e)

    q, k_, v = to_bh(queries), to_bh(keys), to_bh(values)
    q = q / e ** 0.25
    k_ = k_ / e ** 0.25
    dot = jnp.einsum('bte,bse->bts', q, k_)
    if attn.mask:
        row = jnp.arange(t)[:, None]
        col = jnp.arange(t)[None, :]
        dot = jnp.where(col > row, -jnp.inf, dot)
    if mask is not None:
        mask_bh = jnp.broadcast_to(mask[:, None, :, :].astype(jnp.float32),
                                   (b, h, t, t)).reshape(b * h, t, t)
        dot = jnp.where(mask_bh == 0, -1.0e9, dot)
    dot = jax.nn.softmax(dot, axis=2)
    out = jnp.einsum('bts,bse->bte', dot, v)
    out = out.reshape(b, h, t, e).transpose(0, 2, 1, 3).reshape(b * t, h * e)
    return (out @ attn.w_u.T + attn.b_u).reshape(b, t, e)


# --------------------------------- main --------------------------------------

if __name__ == "__main__":
    B, T, EMB, HEADS = 2, 8, 32, 8

    key = jax.random.PRNGKey(0)
    k_x, k_m, k_p = jax.random.split(key, 3)

    x = jax.random.normal(k_x, (B, T, EMB), jnp.float32)
    # external attention mask, shared across heads (1 = keep, 0 = -1e9 fill)
    mask = (jax.random.uniform(k_m, (B, T, T)) > 0.2).astype(jnp.int8)

    for causal in (False, True):
        attn = SelfAttentionPallas(EMB, heads=HEADS, mask=causal, key=k_p)
        out = jax.block_until_ready(attn(x, mask))
        ref = reference_forward(attn, x, mask)
        assert out.shape == (B, T, EMB)
        # bf16 MXU inputs vs fp32 reference -> moderate tolerance.
        assert jnp.allclose(out, ref, atol=5e-2, rtol=5e-2), (
            causal, float(jnp.max(jnp.abs(out - ref))))

    print("KERNEL_OK")
</pallas_src>

<mosaic_0001>
module attributes {stable_mosaic.version = 11 : i64} {
  func.func @_matmul_kernel(%arg0: i32, %arg1: i32, %arg2: i32, %arg3: memref<16x32xbf16, #tpu.memory_space<vmem>>, %arg4: memref<32x256xbf16, #tpu.memory_space<vmem>>, %arg5: memref<16x256xbf16, #tpu.memory_space<vmem>>, %arg6: memref<16x256xf32, #tpu.memory_space<vmem>>) attributes {dimension_semantics = [#tpu.dimension_semantics<parallel>, #tpu.dimension_semantics<parallel>, #tpu.dimension_semantics<arbitrary>], iteration_bounds = array<i64: 1, 3, 1>, scalar_prefetch = 0 : i64, scratch_operands = 1 : i64, tpu.core_type = #tpu.core_type<tc>, window_params = [{transform_indices = @transform_0, window_bounds = array<i64: 16, 32>}, {transform_indices = @transform_1, window_bounds = array<i64: 32, 256>}, {transform_indices = @transform_2, window_bounds = array<i64: 16, 256>}]} {
    %c0_i32 = arith.constant 0 : i32
    %0 = arith.cmpi eq, %arg2, %c0_i32 : i32
    %1 = arith.extui %0 : i1 to i32
    %c0_i32_0 = arith.constant 0 : i32
    %2 = arith.cmpi ne, %1, %c0_i32_0 : i32
    scf.if %2 {
      %cst_10 = arith.constant 0.000000e+00 : f32
      %12 = vector.broadcast %cst_10 : f32 to vector<16x256xf32>
      %c0_11 = arith.constant 0 : index
      %c0_12 = arith.constant 0 : index
      %13 = vector.load %arg6[%c0_11, %c0_12] : memref<16x256xf32, #tpu.memory_space<vmem>>, vector<16x256xf32>
      tpu.vector_store %arg6[%c0_11, %c0_12], %12 {strides = array<i32>} : memref<16x256xf32, #tpu.memory_space<vmem>>, vector<16x256xf32>,
    } else {
    }
    %c0 = arith.constant 0 : index
    %c0_1 = arith.constant 0 : index
    %3 = vector.load %arg6[%c0, %c0_1] : memref<16x256xf32, #tpu.memory_space<vmem>>, vector<16x256xf32>
    %c0_2 = arith.constant 0 : index
    %c0_3 = arith.constant 0 : index
    %4 = vector.load %arg3[%c0_2, %c0_3] : memref<16x32xbf16, #tpu.memory_space<vmem>>, vector<16x32xbf16>
    %c0_4 = arith.constant 0 : index
    %c0_5 = arith.constant 0 : index
    %5 = vector.load %arg4[%c0_4, %c0_5] : memref<32x256xbf16, #tpu.memory_space<vmem>>, vector<32x256xbf16>
    %cst = arith.constant dense<0.000000e+00> : vector<16x256xf32>
    %6 = tpu.matmul %4, %5, %cst {dimension_numbers = #tpu.dot_dimension_numbers<[1], [0], [0], [1], [0, 0, 1, 1], [], []>} : vector<16x32xbf16>, vector<32x256xbf16>, vector<16x256xf32> -> vector<16x256xf32>
    %7 = arith.addf %3, %6 : vector<16x256xf32>
    %c0_6 = arith.constant 0 : index
    %c0_7 = arith.constant 0 : index
    %8 = vector.load %arg6[%c0_6, %c0_7] : memref<16x256xf32, #tpu.memory_space<vmem>>, vector<16x256xf32>
    tpu.vector_store %arg6[%c0_6, %c0_7], %7 {strides = array<i32>} : memref<16x256xf32, #tpu.memory_space<vmem>>, vector<16x256xf32>,
    %c0_i32_8 = arith.constant 0 : i32
    %9 = arith.cmpi eq, %arg2, %c0_i32_8 : i32
    %10 = arith.extui %9 : i1 to i32
    %c0_i32_9 = arith.constant 0 : i32
    %11 = arith.cmpi ne, %10, %c0_i32_9 : i32
    scf.if %11 {
      %c0_10 = arith.constant 0 : index
      %c0_11 = arith.constant 0 : index
      %12 = vector.load %arg6[%c0_10, %c0_11] : memref<16x256xf32, #tpu.memory_space<vmem>>, vector<16x256xf32>
      %13 = arith.truncf %12 : vector<16x256xf32> to vector<16x256xbf16>
      %c0_12 = arith.constant 0 : index
      %c0_13 = arith.constant 0 : index
      %14 = vector.load %arg5[%c0_12, %c0_13] : memref<16x256xbf16, #tpu.memory_space<vmem>>, vector<16x256xbf16>
      tpu.vector_store %arg5[%c0_12, %c0_13], %13 {strides = array<i32>} : memref<16x256xbf16, #tpu.memory_space<vmem>>, vector<16x256xbf16>,
    } else {
    }
    return
  }
  func.func @transform_0(%arg0: i32, %arg1: i32, %arg2: i32) -> (i32, i32) {
    %c0_i32 = arith.constant 0 : i32
    return %arg0, %arg2 : i32, i32
  }
  func.func @transform_1(%arg0: i32, %arg1: i32, %arg2: i32) -> (i32, i32) {
    %c0_i32 = arith.constant 0 : i32
    return %arg2, %arg1 : i32, i32
  }
  func.func @transform_2(%arg0: i32, %arg1: i32, %arg2: i32) -> (i32, i32) {
    %c0_i32 = arith.constant 0 : i32
    return %arg0, %arg1 : i32, i32
  }
}

</mosaic_0001>

<bundles_post_ra>
// kernel: tpu_custom_call.1
= control target key start
LH: loop header
LB: loop body
LE: loop exit
PB: predicated region body
PF: predicated region fallthrough
CT: control target
= control target key end

     0   :  { %7 = vsyncpa [#allocation4], 0  ;;  %s965_s0 = inlined_call_operand.hbm [shape: bf16[16,32], index: 0, kind: input, shape index: {}]   ;;  %s966_s1 = inlined_call_operand.hbm [shape: bf16[32,768], index: 1, kind: input, shape index: {}]   ;;  %s967_s2 = inlined_call_operand.hbm [shape: bf16[16,768], index: 2, kind: output, shape index: {}]  }
   0x1   :  { %8 = vsyncpa [#allocation7], 0 }
   0x2   :  { %10 = vsyncpa [#allocation7 + $0x1], 0 }
   0x3   :  { %11 = vsyncpa [#allocation5], 0 }
   0x4   :  { %13 = vsyncpa [#allocation5 + $0x1], 0  ;;  %s753_s9 = smov 0   ;;  %s755_s10 = smov 0  }
   0x5   :  { %s757_s11 = smov 0   ;;  %s759_s12 = smov 0  }
   0x6   :  { %s761_s13 = smov 0   ;;  %s763_s14 = smov 0  }
   0x7 LB: > { %s462_s15 = sadd.s32 4294967295, %s724_s14   ;;  %s463_s16 = sadd.s32 4294967294, %s724_s14   ;;  %s724_s14 = sphi %s763_s14, %s19_s14   ;;  %s720_s13 = sphi %s761_s13, %s992_s13   ;;  %s716_s12 = sphi %s759_s12, %s991_s12   ;;  %s712_s11 = sphi %s757_s11, %s990_s11   ;;  %s708_s10 = sphi %s755_s10, %s989_s10   ;;  %s704_s9 = sphi %s753_s9, %s988_s9  }
   0x8   : > { %p82_p0 = scmp.ne.s32.totalorder %s712_s11, %s708_s10  ;;  %p83_p1 = scmp.eq.s32.totalorder %s724_s14, 0 }
   0x9   : > { %p88_p2 = scmp.ne.s32.totalorder %s708_s10, %s704_s9  ;;  %p790_p3 = scmp.eq.s32.totalorder %s462_s15, 0 }
   0xa   : > { %p794_p4 = por %p83_p1, %p82_p0  ;;  %p114_p5 = scmp.eq.s32.totalorder %s462_s15, 2 }
   0xb   : > { %s974_s17 = scalar_select %p790_p3, 1, 0 }
   0xc   : > { %p800_p6 = por %p790_p3, %p88_p2  ;;  %p120_p7 = scmp.eq.s32.totalorder %s463_s16, 2 }
   0xd   : > { %p804_p8 = por %p114_p5, %p82_p0  ;;  %p464_p9 = scmp.ge.s32.totalorder %s724_s14, 1 }
   0xe   : > { %s976_s19 = scalar_select %p800_p6, 1, 0 }
   0xf   : > { %s977_s20 = scalar_select %p804_p8, 1, 0 }
  0x10   : > { %p809_p10 = por %p120_p7, %p88_p2  ;;  %p127_p11 = scmp.lt.s32.totalorder %s724_s14, 4 }
  0x11   : > { %s726_s23 = smov [#allocation3]   ;;  %p512_p0 = scmp.lt.s32.totalorder %s724_s14, 3 }
  0x12   : > { %s978_s21 = scalar_select %p809_p10, 1, 0 }
  0x13   : > { %p814_p12 = pnand %p464_p9, %p127_p11  ;;  %s143_s24 = sshll.u32 %s726_s23, 4  ;;  %s144_s24 = int_to_ptr.vmem [resolvable:$true] %s143_s24 }
  0x14   : > { %p829_p2 = pnand %p512_p0, %p794_p4  ;;  %s34_s27 = sadd.s32 1, %s720_s13 }
  0x15   : > { %s979_s22 = scalar_select %p814_p12, 1, 0 }
  0x16   : > { %p499_p13 = pneg %p814_p12  ;;  %s580_s30 = scalar_lea.hbm %s965_s0, 128 }
  0x17   : > { %s981_s26 = scalar_select %p829_p2, 1, 0 }
  0x18   : > { %p823_p1 = pnand %p499_p13, %p790_p3  ;;  %p581_p5 = scmp.ne.s32.totalorder %s965_s0, %s580_s30 }
  0x19   : > { %p587_p4 = scmp.lt.u32.totalorder %s580_s30, %s965_s0 }
  0x1a   : > { %p582_p7 = pneg %p823_p1 }
  0x1c   : > { %p583_p9 = pnand %p582_p7, %p581_p5 }
  0x1e   : > { %p584_p11 = pneg %p583_p9 }
  0x20   : > { %p589_p13 = pnand %p587_p4, %p584_p11 }
  0x22   : > { %592 = shalt.err (!%p589_p13)
}
  0x23   : > { %s593_s7 = scalar_lea.vmem %s144_s24, 128  ;;  %p601_p6 = scmp.lt.s32.totalorder %s144_s24, %s144_s24 }
  0x24   : > { %p594_p0 = scmp.ne.s32.totalorder %s144_s24, %s593_s7  ;;  %p602_p3 = scmp.lt.s32.totalorder %s593_s7, %s593_s7 }
  0x26   : > { %p596_p10 = pnand %p594_p0, %p582_p7  ;;  %p603_p12 = por %p602_p3, %p601_p6 }
  0x28   : > { %p597_p8 = pneg %p596_p10 }
  0x2a   : > { %p604_p2 = pnand %p603_p12, %p597_p8 }
  0x2c   : > { %607 = shalt.err (!%p604_p2)
}
  0x2d   : > { %s727_s8 = smov 64   ;;  %s728_s15 = smov 4  }
  0x2e   : > { %502 = dma.hbm_to_vmem [thread:$0]  (!%p823_p1), %s965_s0, 128, %s144_s24, [#allocation4], %s727_s8, %s727_s8, %s728_s15  }
  0x2f   : > { %p36_p5 = scmp.ge.s32.totalorder %s34_s27, 3  ;;  %s75_s23 = sadd.s32 1, %s712_s11 }
  0x30   : > { %s157_s28 = sand.u32 1, %s712_s11   ;;  %s487_s3 = sshll.u32 %s720_s13, 7 }
  0x31   : > { %s994_s27 = smov (%p36_p5, %s34_s27), 0  ;;  %s467_s29 = sshll.u32 %s157_s28, 5 }
  0x32   : > { %s71_s30 = ssub.s32 %s720_s13, %s994_s27  ;;  %s860_s25 = scalar_lea.hbm %s966_s1, %s487_s3 }
  0x33   : > { %p73_p3 = scmp.eq.s32.totalorder %s71_s30, 0  ;;  %s161_s24 = scalar_lea.vmem [#allocation6], %s467_s29 }
  0x34   : > { %s171_s6 = sshll.u32 %s161_s24, 4  ;;  %s867_s8 = scalar_lea.sflag [#allocation7], %s157_s28  ;;  %s865_s6 = int_to_ptr.vmem [resolvable:$true] %s171_s6 }
  0x35   : > { %s863_s7 = scalar_select %p73_p3, %s712_s11, %s75_s23  }
  0x36   : > { %s608_s15 = scalar_lea.hbm %s860_s25, 512  ;;  %p982_p8 = scmp.ne.s32.totalorder %s981_s26, 0 }
  0x37   : > { %p609_p6 = scmp.ne.s32.totalorder %s860_s25, %s608_s15  ;;  %s613_s30 = scalar_lea.hbm %s966_s1, 1536 }
  0x38   : > { %p610_p10 = pneg %p982_p8  ;;  %p614_p2 = scmp.lt.u32.totalorder %s860_s25, %s966_s1 }
  0x39   : > { %p615_p7 = scmp.lt.u32.totalorder %s613_s30, %s608_s15  ;;  %p617_p11 = scmp.lt.u32.totalorder %s608_s15, %s860_s25 }
  0x3a   : > { %p611_p12 = pnand %p610_p10, %p609_p6 }
  0x3b   : > { %p616_p9 = por %p615_p7, %p614_p2 }
  0x3c   : > { %p612_p1 = pneg %p611_p12 }
  0x3d   : > { %p618_p4 = por %p617_p11, %p616_p9 }
  0x3f   : > { %p619_p13 = pnand %p618_p4, %p612_p1 }
  0x41   : > { %622 = shalt.err (!%p619_p13)
}
  0x42   : > { %s623_s23 = scalar_lea.vmem %s865_s6, 512  ;;  %s729_s28 = smov [#allocation6]  }
  0x43   : > { %p624_p0 = scmp.ne.s32.totalorder %s865_s6, %s623_s23  ;;  %s628_s4 = sshll.u32 %s729_s28, 4  ;;  %s629_s4 = int_to_ptr.vmem [resolvable:$false] %s628_s4 }
  0x44   : > { %s630_s5 = scalar_lea.vmem %s629_s4, 1024  ;;  %p631_p6 = scmp.lt.s32.totalorder %s865_s6, %s629_s4 }
  0x45   : > { %p626_p5 = pnand %p624_p0, %p610_p10  ;;  %p632_p12 = scmp.lt.s32.totalorder %s630_s5, %s623_s23 }
  0x47   : > { %p627_p3 = pneg %p626_p5  ;;  %p633_p2 = por %p632_p12, %p631_p6 }
  0x49   : > { %p634_p7 = pnand %p633_p2, %p627_p3 }
  0x4b   : > { %637 = shalt.err (!%p634_p7)
}
  0x4c   : > { %s730_s24 = smov 384   ;;  %s731_s15 = smov 128  }
  0x4d   : > { %s732_s16 = smov 8   ;;  %p983_p10 = scmp.ne.s32.totalorder %s979_s22, 0 }
  0x4e   : > { %506 = dma.hbm_to_vmem [thread:$0]  (!%p982_p8), %s860_s25, 512, %s865_s6, %s867_s8, %s730_s24, %s731_s15, %s732_s16  }
  0x4f   : > { %183 = sbr.rel (%p983_p10) target bundleno = 333 (0x14d), region = 28  ;;  %p984_p1 = scmp.ne.s32.totalorder (!%p983_p10), %s974_s17, 0 }
  0x56   : > { %691 = dma.done.wait (%p984_p1), [#allocation4], 128  }
  0x57   : > { %693 = vsyncadd (%p984_p1), [#allocation4], 4294967168  ;;  %s902_s18 = sand.u32 1, %s708_s10   ;;  %p985_p9 = scmp.ne.s32.totalorder %s976_s19, 0 }
  0x58   : > { %s472_s30 = sshll.u32 %s902_s18, 5  ;;  %s190_s29 = scalar_lea.sflag [#allocation7], %s902_s18 }
  0x59   : > { %s193_s3 = scalar_lea.vmem [#allocation6], %s472_s30 }
  0x5a   : > { %695 = dma.done.wait (%p985_p9), %s190_s29, 512  }
  0x5b   : > { %697 = vsyncadd (%p985_p9), %s190_s29, 4294966784  ;;  %v733_v0 = vmov 0   ;;  %v573_v1 = vld [vmem:[%s193_s3 + $0x4] ss:$8 sps:$4 sm:$0xff]   ;;  %v575_v2 = vld [vmem:[%s193_s3] ss:$8 sps:$4 sm:$0xff]  }
  0x5c   : > { %299 = vmatprep.mubr.bf16.mxu0 %v733_v0  ;;  %267 = vmatprep.subr.bf16.mxu0 %v573_v1  ;;  %v576_v3 = vld [vmem:[%s193_s3 + $0x14] ss:$8 sps:$4 sm:$0xff]   ;;  %v578_v4 = vld [vmem:[%s193_s3 + $0x10] ss:$8 sps:$4 sm:$0xff]   ;;  %vm263_vm0 = vcmask 261120   ;;  %s473_s17 = sshll.u32 %s902_s18, 4 }
  0x5d   : > { %268 = vmatpush1.bf16.msra.mxu0 %v575_v2  ;;  %v579_v5 = vld [vmem:[#allocation3] sm:$0xff]   ;;  %s213_s22 = scalar_lea.vmem [#allocation8], %s473_s17  ;;  %s490_s26 = sshll.u32 %s716_s12, 7 }
  0x5e   : > { %269 = vmatprep.subr.bf16.mxu0 %v576_v3  ;;  %s356_s19 = sshll.u32 %s213_s22, 4  ;;  %s917_s8 = scalar_lea.hbm %s967_s2, %s490_s26  ;;  %s912_s19 = int_to_ptr.vmem [resolvable:$true] %s356_s19 }
  0x5f   : > { %s340_s23 = scalar_lea.sflag [#allocation5], %s902_s18  ;;  %s638_s28 = scalar_lea.vmem %s912_s19, 256 }
  0x60   : > { %p639_p8 = scmp.ne.s32.totalorder %s912_s19, %s638_s28  ;;  %p986_p11 = scmp.ne.s32.totalorder %s977_s20, 0 }
  0x61   : > { %270 = vmatpush1.bf16.msra.mxu0 %v578_v4  ;;  %s734_s12 = smov [#allocation8]  }
  0x62   : > { %p640_p4 = pnand %p639_p8, %p986_p11  ;;  %s642_s4 = sshll.u32 %s734_s12, 4  ;;  %s643_s4 = int_to_ptr.vmem [resolvable:$false] %s642_s4 }
  0x63   : > { %s644_s5 = scalar_lea.vmem %s643_s4, 512  ;;  %p645_p0 = scmp.lt.s32.totalorder %s912_s19, %s643_s4 }
  0x64   : > { %479 = vmatmul.mubr.msk.bf16.vlgmr.msra.gmra.mrb[0].mxu0 %vm263_vm0, %v579_v5  ;;  %p641_p13 = pneg %p640_p4  ;;  %p646_p5 = scmp.lt.s32.totalorder %s644_s5, %s638_s28 }
  0x66   : > { %p647_p3 = por %p646_p5, %p645_p0 }
  0x68   : > { %p648_p6 = pnand %p647_p3, %p641_p13 }
 0x137   : > { %v301_v6 = vpop.f32.mrb[0].mxu0 }
 0x138   : > { %v303_v7 = vpop.f32.mrb[1].mxu0 }
 0x139   : > { %v488_v8 = vpack.c.bf16 %v303_v7, %v301_v6  ;;  %v305_v9 = vpop.f32.mrb[2].mxu0 }
 0x13a   : > { %v307_v10 = vpop.f32.mrb[3].mxu0 }
 0x13b   : > { %337 = vst [vmem:[%s213_s22] sm:$0xff] %v488_v8  ;;  %v489_v11 = vpack.c.bf16 %v307_v10, %v305_v9 }
 0x13d   : > { %338 = vst [vmem:[%s213_s22 + $0x8] sm:$0xff] %v489_v11 }
 0x13e   : > { %651 = shalt.err (!%p648_p6)
}
 0x13f   : > { %s652_s24 = scalar_lea.hbm %s917_s8, 256  ;;  %s656_s30 = scalar_lea.hbm %s967_s2, 768 }
 0x140   : > { %p653_p12 = scmp.ne.s32.totalorder %s917_s8, %s652_s24  ;;  %p657_p10 = scmp.lt.u32.totalorder %s917_s8, %s967_s2 }
 0x141   : > { %p658_p1 = scmp.lt.u32.totalorder %s656_s30, %s652_s24  ;;  %p660_p8 = scmp.lt.u32.totalorder %s652_s24, %s917_s8 }
 0x142   : > { %p654_p2 = pnand %p653_p12, %p986_p11 }
 0x143   : > { %p659_p9 = por %p658_p1, %p657_p10 }
 0x144   : > { %p655_p7 = pneg %p654_p2 }
 0x145   : > { %p661_p4 = por %p660_p8, %p659_p9 }
 0x147   : > { %p662_p13 = pnand %p661_p4, %p655_p7 }
 0x149   : > { %665 = shalt.err (!%p662_p13)
}
 0x14a   : > { %s735_s17 = smov 128   ;;  %s736_s22 = smov 384  }
 0x14b   : > { %s737_s26 = smov 8  }
 0x14c   : > { %497 = dma.vmem_to_hbm [thread:$0]  (%p986_p11), %s912_s19, 256, %s917_s8, %s340_s23, %s735_s17, %s736_s22, %s737_s26  }
 0x14d PF: > { %p514_p0 = scmp.ge.s32.totalorder %s724_s14, 2  ;;  %s371_s25 = sand.u32 1, %s704_s9  }
 0x14e   : > { %p987_p5 = scmp.ne.s32.totalorder %s978_s21, 0  ;;  %s372_s6 = scalar_lea.sflag [#allocation5], %s371_s25 }
 0x150   : > { %p508_p3 = pnand %p514_p0, %p987_p5 }
 0x152   : > { %699 = dma.done.wait (!%p508_p3), %s372_s6, 256  }
 0x153   : > { %701 = vsyncadd (!%p508_p3), %s372_s6, 4294967040  ;;  %s19_s14 = sadd.s32 1, %s724_s14   ;;  %s988_s9 = smov %s708_s10 }
 0x154   : > { %p16_p6 = scmp.ge.s32.totalorder %s19_s14, 5   ;;  %s989_s10 = smov %s712_s11 }
 0x155   : > { %s990_s11 = smov %s863_s7  ;;  %s991_s12 = smov %s720_s13 }
 0x156   : > { %s992_s13 = smov %s994_s27  ;;  %18 = sbr.rel (!%p16_p6) target bundleno = 7 (0x7), region = 87 }
 0x15d   :  { %377 = vsyncpa [#allocation4], 1 }
 0x15e   :  { %379 = vsyncpa [#allocation4 + $0x1], 1 }
 0x15f   :  { %380 = vsyncpa [#allocation7], 1 }
 0x160   :  { %382 = vsyncpa [#allocation7 + $0x1], 1 }
 0x161   :  { %383 = vsyncpa [#allocation5], 1 }
 0x162   :  { %385 = vsyncpa [#allocation5 + $0x1], 1 }

</bundles_post_ra>
